<compile_context>
chip_gen: v7x
topology: tpu7x:2x2x1
jax: 0.10.0
libtpu: 0.0.40
codegen_flags: <defaults>
</compile_context>

<pallas_src>
import numpy as np
import jax
import jax.numpy as jnp
from jax.experimental import pallas as pl
from jax.experimental.pallas import tpu as pltpu


def _rsc_kernel(x3_ref, x4_ref, x5_ref, o_ref):
    # x3_ref: (Nb, K3), x4_ref: (Nb, K4), x5_ref: (Nb, K5), o_ref: (Nb, K3+K4+K5)
    k3 = x3_ref.shape[1]
    k4 = x4_ref.shape[1]
    k5 = x5_ref.shape[1]
    # Three contiguous, static, lane-dense slice stores (unmasked when the concat
    # boundaries are 128-aligned, which they are for the standard RSC shapes).
    o_ref[:, 0:k3] = x3_ref[...]
    o_ref[:, k3:k3 + k4] = x4_ref[...]
    o_ref[:, k3 + k4:k3 + k4 + k5] = x5_ref[...]


def rsc_forward(x):
    """RSC.forward: x = (p3, p4, p5) NCHW tensors -> (N, sum_i Ci*Hi*Wi)."""
    p3, p4, p5 = x
    n = p3.shape[0]
    assert p4.shape[0] == n and p5.shape[0] == n, "batch dims must match"

    # Row-major flatten (identical to torch .reshape(N, -1)); done in the wrapper so
    # the kernel sees lane-dense 2-D slabs.
    x3 = p3.reshape(n, -1)
    x4 = p4.reshape(n, -1)
    x5 = p5.reshape(n, -1)
    k3, k4, k5 = x3.shape[1], x4.shape[1], x5.shape[1]
    k_total = k3 + k4 + k5
    dtype = p3.dtype
    itemsize = jnp.dtype(dtype).itemsize

    # Pure copy: bytes in + bytes out, zero flops — hint the XLA scheduler.
    bytes_accessed = 2 * n * k_total * itemsize
    cost = pl.CostEstimate(flops=0, transcendentals=0, bytes_accessed=bytes_accessed)

    # Conservative VMEM budget (v7x has 64 MiB/TC; leave headroom).
    VMEM_BUDGET = 48 * 1024 * 1024
    vmem_needed = 2 * n * k_total * itemsize  # all inputs + output resident at once

    if vmem_needed <= VMEM_BUDGET:
        # Fast path: single invocation, whole arrays VMEM resident, no grid pipeline.
        return pl.pallas_call(
            _rsc_kernel,
            out_shape=jax.ShapeDtypeStruct((n, k_total), dtype),
            in_specs=[
                pl.BlockSpec(memory_space=pltpu.MemorySpace.VMEM),
                pl.BlockSpec(memory_space=pltpu.MemorySpace.VMEM),
                pl.BlockSpec(memory_space=pltpu.MemorySpace.VMEM),
            ],
            out_specs=pl.BlockSpec(memory_space=pltpu.MemorySpace.VMEM),
            cost_estimate=cost,
        )(x3, x4, x5)

    # Large-batch fallback: tile over rows (sublane dim) only; each block keeps the
    # full lane-dense K extent so stores stay unmasked along lanes. Pick the largest
    # multiple-of-8 row tile that (double-buffered, in+out) fits the budget.
    per_row_bytes = 2 * k_total * itemsize  # in + out per row
    tn = (VMEM_BUDGET // (2 * per_row_bytes)) // 8 * 8  # /2 for double buffering
    tn = int(max(8, min(tn, n)))
    grid = (pl.cdiv(n, tn),)
    return pl.pallas_call(
        _rsc_kernel,
        out_shape=jax.ShapeDtypeStruct((n, k_total), dtype),
        grid=grid,
        in_specs=[
            pl.BlockSpec((tn, k3), lambda i: (i, 0)),
            pl.BlockSpec((tn, k4), lambda i: (i, 0)),
            pl.BlockSpec((tn, k5), lambda i: (i, 0)),
        ],
        out_specs=pl.BlockSpec((tn, k_total), lambda i: (i, 0)),
        compiler_params=pltpu.CompilerParams(dimension_semantics=("parallel",)),
        cost_estimate=cost,
    )(x3, x4, x5)


if __name__ == "__main__":
    key = jax.random.PRNGKey(0)
    k3, k4, k5 = jax.random.split(key, 3)

    # Three pyramid levels (NCHW), as implied by the forward's tuple input.
    p3 = jax.random.normal(k3, (2, 4, 16, 16), jnp.float32)
    p4 = jax.random.normal(k4, (2, 8, 12, 12), jnp.float32)
    p5 = jax.random.normal(k5, (2, 16, 8, 8), jnp.float32)

    out = rsc_forward((p3, p4, p5))
    jax.block_until_ready(out)

    ref = np.concatenate(
        [
            np.asarray(p3).reshape(2, -1),
            np.asarray(p4).reshape(2, -1),
            np.asarray(p5).reshape(2, -1),
        ],
        axis=1,
    )
    assert out.shape == (2, 4 * 16 * 16 + 8 * 12 * 12 + 16 * 8 * 8)
    np.testing.assert_array_equal(np.asarray(out), ref)

    print("KERNEL_OK")
</pallas_src>

<mosaic_0001>
module attributes {stable_mosaic.version = 11 : i64} {
  func.func @_rsc_kernel(%arg0: memref<2x1024xf32, #tpu.memory_space<vmem>>, %arg1: memref<2x1152xf32, #tpu.memory_space<vmem>>, %arg2: memref<2x1024xf32, #tpu.memory_space<vmem>>, %arg3: memref<2x3200xf32, #tpu.memory_space<vmem>>) attributes {dimension_semantics = [], scalar_prefetch = 0 : i64, scratch_operands = 0 : i64, tpu.core_type = #tpu.core_type<tc>} {
    %c0 = arith.constant 0 : index
    %c0_0 = arith.constant 0 : index
    %0 = vector.load %arg0[%c0, %c0_0] : memref<2x1024xf32, #tpu.memory_space<vmem>>, vector<2x1024xf32>
    %c0_1 = arith.constant 0 : index
    %c0_2 = arith.constant 0 : index
    %1 = vector.load %arg3[%c0_1, %c0_2] : memref<2x3200xf32, #tpu.memory_space<vmem>>, vector<2x1024xf32>
    tpu.vector_store %arg3[%c0_1, %c0_2], %0 {strides = array<i32>} : memref<2x3200xf32, #tpu.memory_space<vmem>>, vector<2x1024xf32>,
    %c0_3 = arith.constant 0 : index
    %c0_4 = arith.constant 0 : index
    %2 = vector.load %arg1[%c0_3, %c0_4] : memref<2x1152xf32, #tpu.memory_space<vmem>>, vector<2x1152xf32>
    %c0_5 = arith.constant 0 : index
    %c1024 = arith.constant 1024 : index
    %3 = vector.load %arg3[%c0_5, %c1024] : memref<2x3200xf32, #tpu.memory_space<vmem>>, vector<2x1152xf32>
    tpu.vector_store %arg3[%c0_5, %c1024], %2 {strides = array<i32>} : memref<2x3200xf32, #tpu.memory_space<vmem>>, vector<2x1152xf32>,
    %c0_6 = arith.constant 0 : index
    %c0_7 = arith.constant 0 : index
    %4 = vector.load %arg2[%c0_6, %c0_7] : memref<2x1024xf32, #tpu.memory_space<vmem>>, vector<2x1024xf32>
    %c0_8 = arith.constant 0 : index
    %c2176 = arith.constant 2176 : index
    %5 = vector.load %arg3[%c0_8, %c2176] : memref<2x3200xf32, #tpu.memory_space<vmem>>, vector<2x1024xf32>
    tpu.vector_store %arg3[%c0_8, %c2176], %4 {strides = array<i32>} : memref<2x3200xf32, #tpu.memory_space<vmem>>, vector<2x1024xf32>,
    return
  }
}

</mosaic_0001>

<bundles_post_ra>
// kernel: tpu_custom_call.1
= control target key start
LH: loop header
LB: loop body
LE: loop exit
PB: predicated region body
PF: predicated region fallthrough
CT: control target
= control target key end

     0   :  { %8 = vsyncpa [#allocation3], 0  ;;  %s250_s0 = inlined_call_operand.hbm [shape: f32[2,1024], index: 0, kind: input, shape index: {}]   ;;  %s251_s1 = inlined_call_operand.hbm [shape: f32[2,1152], index: 1, kind: input, shape index: {}]   ;;  %s252_s2 = inlined_call_operand.hbm [shape: f32[2,1024], index: 2, kind: input, shape index: {}]   ;;  %s253_s3 = inlined_call_operand.hbm [shape: f32[2,3200], index: 3, kind: output, shape index: {}]  }
   0x1   :  { %9 = vsyncpa [#allocation6], 0 }
   0x2   :  { %10 = vsyncpa [#allocation4], 0  ;;  %s178_s12 = smov [#allocation5]   ;;  %s179_s14 = smov [#allocation2]  }
   0x3   :  { %s27_s13 = sshll.u32 %s178_s12, 4  ;;  %s17_s15 = sshll.u32 %s179_s14, 4  ;;  %s28_s13 = int_to_ptr.vmem [resolvable:$true] %s27_s13  ;;  %s18_s15 = int_to_ptr.vmem [resolvable:$true] %s17_s15 }
   0x4   :  { %s84_s18 = scalar_lea.hbm %s251_s1, 288 }
   0x5   :  { %p85_p0 = scmp.ne.s32.totalorder %s251_s1, %s84_s18  ;;  %p88_p1 = scmp.lt.u32.totalorder %s84_s18, %s251_s1 }
   0x7   :  { %p90_p2 = pnand %p88_p1, %p85_p0 }
   0x9   :  { %93 = shalt.err (!%p90_p2)
}
   0xa   :  { %s94_s23 = scalar_lea.vmem %s28_s13, 288  ;;  %p99_p4 = scmp.lt.s32.totalorder %s28_s13, %s28_s13 }
   0xb   :  { %p95_p3 = scmp.ne.s32.totalorder %s28_s13, %s94_s23  ;;  %p100_p5 = scmp.lt.s32.totalorder %s94_s23, %s94_s23 }
   0xd   :  { %p101_p6 = por %p100_p5, %p99_p4 }
   0xf   :  { %p102_p7 = pnand %p101_p6, %p95_p3 }
  0x11   :  { %105 = shalt.err (!%p102_p7)
}
  0x12   :  { %30 = dma.hbm_to_vmem [thread:$0]  %s251_s1, 288, %s28_s13, [#allocation6]  }
  0x13   :  { %s106_s28 = scalar_lea.hbm %s250_s0, 256 }
  0x14   :  { %p107_p8 = scmp.ne.s32.totalorder %s250_s0, %s106_s28  ;;  %p110_p9 = scmp.lt.u32.totalorder %s106_s28, %s250_s0 }
  0x16   :  { %p112_p10 = pnand %p110_p9, %p107_p8 }
  0x18   :  { %115 = shalt.err (!%p112_p10)
}
  0x19   :  { %s116_s6 = scalar_lea.vmem %s18_s15, 256  ;;  %p121_p12 = scmp.lt.s32.totalorder %s18_s15, %s18_s15 }
  0x1a   :  { %p117_p11 = scmp.ne.s32.totalorder %s18_s15, %s116_s6  ;;  %p122_p13 = scmp.lt.s32.totalorder %s116_s6, %s116_s6 }
  0x1c   :  { %p123_p0 = por %p122_p13, %p121_p12 }
  0x1e   :  { %p124_p1 = pnand %p123_p0, %p117_p11 }
  0x20   :  { %127 = shalt.err (!%p124_p1)
}
  0x21   :  { %20 = dma.hbm_to_vmem [thread:$0]  %s250_s0, 256, %s18_s15, [#allocation3]  }
  0x22   :  { %s180_s8 = smov [#allocation7]   ;;  %s128_s12 = scalar_lea.hbm %s252_s2, 256 }
  0x23   :  { %s37_s9 = sshll.u32 %s180_s8, 4  ;;  %p129_p2 = scmp.ne.s32.totalorder %s252_s2, %s128_s12  ;;  %s38_s9 = int_to_ptr.vmem [resolvable:$true] %s37_s9 }
  0x24   :  { %p132_p3 = scmp.lt.u32.totalorder %s128_s12, %s252_s2 }
  0x26   :  { %p134_p4 = pnand %p132_p3, %p129_p2 }
  0x28   :  { %137 = shalt.err (!%p134_p4)
}
  0x29   :  { %s138_s18 = scalar_lea.vmem %s38_s9, 256  ;;  %p143_p6 = scmp.lt.s32.totalorder %s38_s9, %s38_s9 }
  0x2a   :  { %p139_p5 = scmp.ne.s32.totalorder %s38_s9, %s138_s18  ;;  %p144_p7 = scmp.lt.s32.totalorder %s138_s18, %s138_s18 }
  0x2c   :  { %p145_p8 = por %p144_p7, %p143_p6 }
  0x2e   :  { %p146_p9 = pnand %p145_p8, %p139_p5 }
  0x30   :  { %149 = shalt.err (!%p146_p9)
}
  0x31   :  { %40 = dma.hbm_to_vmem [thread:$0]  %s252_s2, 256, %s38_s9, [#allocation6]  }
  0x32   :  { %172 = dma.done.wait [#allocation3], 256  }
  0x33   :  { %173 = vsyncadd [#allocation3], 4294967040 }
  0x34   :  { %174 = dma.done.wait [#allocation6], 544  }
  0x35   :  { %175 = vsyncadd [#allocation6], 4294966752  ;;  %s181_s19 = smov [#allocation8]   ;;  %v50_v0 = vld [vmem:[#allocation2] sm:$0xff]  ;;  %v51_v1 = vld [vmem:[#allocation2 + $0x8] sm:$0xff] }
  0x36   :  { %s70_s20 = sshll.u32 %s181_s19, 4  ;;  %v54_v2 = vld [vmem:[#allocation5] sm:$0xff]  ;;  %52 = vst [vmem:[#allocation8] sm:$0xff] %v50_v0  ;;  %53 = vst [vmem:[#allocation8 + $0x8] sm:$0xff] %v51_v1  ;;  %v55_v3 = vld [vmem:[#allocation5 + $0x8] sm:$0xff]  ;;  %s71_s20 = int_to_ptr.vmem [resolvable:$true] %s70_s20 }
  0x37   :  { %57 = vst [vmem:[#allocation8 + $0x10] sm:$0xff] %v54_v2  ;;  %v56_v4 = vld [vmem:[#allocation5 + $0x10] sm:$0x3]  ;;  %v60_v5 = vld [vmem:[#allocation7] sm:$0xff]  ;;  %58 = vst [vmem:[#allocation8 + $0x18] sm:$0xff] %v55_v3  ;;  %s150_s2 = scalar_lea.vmem %s71_s20, 800  ;;  %p155_p11 = scmp.lt.s32.totalorder %s71_s20, %s71_s20 }
  0x38   :  { %59 = vst [vmem:[#allocation8 + $0x20] sm:$0x3] %v56_v4  ;;  %62 = vst [vmem:[#allocation8 + $0x22] sm:$0xff] %v60_v5  ;;  %v61_v6 = vld [vmem:[#allocation7 + $0x8] sm:$0xff]  ;;  %p151_p10 = scmp.ne.s32.totalorder %s71_s20, %s150_s2  ;;  %p156_p12 = scmp.lt.s32.totalorder %s150_s2, %s150_s2 }
  0x39   :  { %63 = vst [vmem:[#allocation8 + $0x2a] sm:$0xff] %v61_v6 }
  0x3a   :  { %p157_p13 = por %p156_p12, %p155_p11 }
  0x3c   :  { %p158_p0 = pnand %p157_p13, %p151_p10 }
  0x3e   :  { %161 = shalt.err (!%p158_p0)
}
  0x3f   :  { %s162_s23 = scalar_lea.hbm %s253_s3, 800 }
  0x40   :  { %p163_p1 = scmp.ne.s32.totalorder %s253_s3, %s162_s23  ;;  %p166_p2 = scmp.lt.u32.totalorder %s162_s23, %s253_s3 }
  0x42   :  { %p168_p3 = pnand %p166_p2, %p163_p1 }
  0x44   :  { %171 = shalt.err (!%p168_p3)
}
  0x45   :  { %73 = dma.vmem_to_hbm [thread:$0]  %s71_s20, 800, %s253_s3, [#allocation4]  }
  0x46   :  { %176 = dma.done.wait [#allocation4], 800  }
  0x47   :  { %177 = vsyncadd [#allocation4], 4294966496 }
  0x48   :  { %77 = vsyncpa [#allocation3], 1 }
  0x49   :  { %78 = vsyncpa [#allocation6], 1 }
  0x4a   :  { %79 = vsyncpa [#allocation4], 1 }

</bundles_post_ra>
